<compile_context>
chip_gen: v7x
topology: tpu7x:2x2x1
jax: 0.10.0
libtpu: 0.0.40
codegen_flags: <defaults>
</compile_context>

<pallas_src>
import jax
import jax.numpy as jnp
from jax.experimental import pallas as pl
from jax.experimental.pallas import tpu as pltpu


def _round_up(x, m):
    return ((x + m - 1) // m) * m


def _largest_divisor_leq(n, cap):
    cap = max(1, min(n, cap))
    for d in range(cap, 0, -1):
        if n % d == 0:
            return d
    return 1


def _tpu_generation():
    try:
        kind = jax.devices()[0].device_kind.lower()
    except Exception:
        return 6
    for g in (7, 6, 5):
        if "v%d" % g in kind:
            return g
    return 6


def _pwise_kernel(x_ref, w_ref, b_ref, o_ref):
    # x_ref: (Cin, tn) if the image-batch dim is squeezed, else (Nb, Cin, tn)
    # w_ref: (Cout, Cin)   full weight, resident across the grid
    # b_ref: (Cout, 1)     bias (f32), broadcast over lanes
    # o_ref: matches x_ref with Cin -> Cout
    w = w_ref[...]
    b = b_ref[...]
    if len(x_ref.shape) == 2:
        acc = jnp.dot(w, x_ref[...], preferred_element_type=jnp.float32)
        o_ref[...] = (acc + b).astype(o_ref.dtype)
    else:
        for i in range(x_ref.shape[0]):          # static, small Nb
            acc = jnp.dot(w, x_ref[i], preferred_element_type=jnp.float32)
            o_ref[i] = (acc + b).astype(o_ref.dtype)


@jax.jit
def pwise_forward(x_nchw, weight, bias):
    """1x1 conv, stride=1, padding=0 (matches nn.Conv2d(inChans, outChans, 1)).

    x_nchw: (N, Cin, H, W); weight: (Cout, Cin, 1, 1); bias: (Cout,)
    returns (N, Cout, H, W)
    """
    N, Cin, H, W = x_nchw.shape
    Cout = weight.shape[0]
    HW = H * W
    itemsize = jnp.dtype(x_nchw.dtype).itemsize

    # NCHW-native operands: spatial axis is lane-dense, no HBM transposes.
    x3d = x_nchw.reshape(N, Cin, HW)
    w2d = weight.reshape(Cout, Cin)
    b2d = bias.astype(jnp.float32).reshape(Cout, 1)

    gen = _tpu_generation()
    # Per-step payload target (x tile in + out tile out), sized so DMA time
    # dwarfs the ~0.35 us fixed per-grid-step overhead on each generation.
    target_bytes = {5: 512 << 10, 6: 1 << 20, 7: 2 << 20}.get(gen, 1 << 20)
    # Stay well inside physical VMEM: 64 MiB/TC on v7x, 128 MiB on v5e/v6e.
    vmem_cap = (48 << 20) if gen >= 7 else (100 << 20)

    bytes_per_lane = (Cin + Cout) * itemsize
    target_lanes = max(128, target_bytes // bytes_per_lane)

    if HW <= target_lanes:
        # Whole spatial extent per block (full last dim -> always legal, no
        # padding, no post-slice); batch images to fill the payload.
        tn = HW
        nb = _largest_divisor_leq(N, target_lanes // HW)
        hw_steps = 1
    else:
        # Lane-dense multiple-of-128 spatial tile; a ragged final block (if
        # HW % tn != 0) is handled by Pallas boundary masking.
        nb = 1
        tn = max(128, min(_round_up(target_lanes, 128), (HW // 128) * 128))
        hw_steps = pl.cdiv(HW, tn)
    n_steps = N // nb

    # If the whole problem fits a single grid step, split across images so
    # both TensorCores (v7x megacore) get work — only if each half still moves
    # enough payload to amortize the per-step overhead.
    if n_steps * hw_steps == 1 and nb > 1:
        if (nb // 2) * tn * bytes_per_lane >= (256 << 10):
            nb = _largest_divisor_leq(N, nb // 2)
            n_steps = N // nb

    # VMEM working set: double-buffered x/out tiles (channel dims rounded up
    # to the sublane grain), the f32 matmul accumulator, resident weight/bias.
    sub = max(1, (8 * 4) // itemsize)
    cin_p, cout_p = _round_up(Cin, sub), _round_up(Cout, sub)
    cout_f32 = _round_up(Cout, 8)
    est = 2 * nb * (cin_p + cout_p) * tn * itemsize          # pipelined tiles
    est += cout_f32 * tn * 4                                  # f32 accumulator
    est += (cout_f32 * _round_up(Cin, 8) + cout_f32) * 4      # weight + bias
    vmem_limit = int(min(max(2 * est, 16 << 20), vmem_cap))

    if nb == 1:
        x_block = (pl.Squeezed(), Cin, tn)
        o_block = (pl.Squeezed(), Cout, tn)
    else:
        x_block = (nb, Cin, tn)
        o_block = (nb, Cout, tn)

    out3d = pl.pallas_call(
        _pwise_kernel,
        out_shape=jax.ShapeDtypeStruct((N, Cout, HW), x3d.dtype),
        grid_spec=pltpu.PrefetchScalarGridSpec(
            num_scalar_prefetch=0,
            grid=(n_steps, hw_steps),
            in_specs=[
                pl.BlockSpec(x_block, lambda n, t: (n, 0, t)),      # x tile
                pl.BlockSpec((Cout, Cin), lambda n, t: (0, 0)),     # weight
                pl.BlockSpec((Cout, 1), lambda n, t: (0, 0)),       # bias
            ],
            out_specs=pl.BlockSpec(o_block, lambda n, t: (n, 0, t)),
        ),
        compiler_params=pltpu.CompilerParams(
            dimension_semantics=("parallel", "parallel"),
            vmem_limit_bytes=vmem_limit,
        ),
    )(x3d, w2d, b2d)

    return out3d.reshape(N, Cout, H, W)


if __name__ == "__main__":
    # Deterministic parameters / inputs.
    key = jax.random.PRNGKey(0)
    k_x, k_w, k_b = jax.random.split(key, 3)

    N, Cin, H, W = 2, 4, 16, 16
    Cout = 8

    x = jax.random.normal(k_x, (N, Cin, H, W), dtype=jnp.float32)
    # Conv2d-style init scale ~ 1/sqrt(fan_in); exact distribution irrelevant,
    # just deterministic shapes matching nn.Conv2d(inChans, outChans, 1).
    fan_in = Cin * 1 * 1
    bound = 1.0 / jnp.sqrt(fan_in)
    weight = jax.random.uniform(k_w, (Cout, Cin, 1, 1), dtype=jnp.float32,
                                minval=-bound, maxval=bound)
    bias = jax.random.uniform(k_b, (Cout,), dtype=jnp.float32,
                              minval=-bound, maxval=bound)

    out = pwise_forward(x, weight, bias)
    jax.block_until_ready(out)

    # Reference check in plain JAX (same math as PyTorch 1x1 conv).
    ref = jnp.einsum("nchw,oc->nohw", x, weight.reshape(Cout, Cin)) + \
        bias.reshape(1, Cout, 1, 1)
    assert out.shape == (N, Cout, H, W)
    assert jnp.allclose(out, ref, atol=1e-5, rtol=1e-5)

    print("KERNEL_OK")
</pallas_src>

<mosaic_0001>
module attributes {stable_mosaic.version = 11 : i64} {
  func.func @_pwise_kernel(%arg0: i32, %arg1: i32, %arg2: memref<2x4x256xf32, #tpu.memory_space<vmem>>, %arg3: memref<8x4xf32, #tpu.memory_space<vmem>>, %arg4: memref<8x1xf32, #tpu.memory_space<vmem>>, %arg5: memref<2x8x256xf32, #tpu.memory_space<vmem>>) attributes {dimension_semantics = [#tpu.dimension_semantics<parallel>, #tpu.dimension_semantics<parallel>], iteration_bounds = array<i64: 1, 1>, scalar_prefetch = 0 : i64, scratch_operands = 0 : i64, tpu.core_type = #tpu.core_type<tc>, window_params = [{transform_indices = @transform_0, window_bounds = array<i64: 2, 4, 256>}, {pipeline_mode = #tpu.pipeline_mode<synchronous>, transform_indices = @transform_1, window_bounds = array<i64: 8, 4>}, {pipeline_mode = #tpu.pipeline_mode<synchronous>, transform_indices = @transform_2, window_bounds = array<i64: 8, 1>}, {transform_indices = @transform_3, window_bounds = array<i64: 2, 8, 256>}]} {
    %c0 = arith.constant 0 : index
    %c0_0 = arith.constant 0 : index
    %0 = vector.load %arg3[%c0, %c0_0] : memref<8x4xf32, #tpu.memory_space<vmem>>, vector<8x4xf32>
    %c0_1 = arith.constant 0 : index
    %c0_2 = arith.constant 0 : index
    %1 = vector.load %arg4[%c0_1, %c0_2] : memref<8x1xf32, #tpu.memory_space<vmem>>, vector<8x1xf32>
    %c0_3 = arith.constant 0 : index
    %c0_4 = arith.constant 0 : index
    %c0_5 = arith.constant 0 : index
    %2 = vector.load %arg2[%c0_3, %c0_4, %c0_5] : memref<2x4x256xf32, #tpu.memory_space<vmem>>, vector<1x4x256xf32>
    %3 = vector.shape_cast %2 : vector<1x4x256xf32> to vector<4x256xf32>
    %cst = arith.constant dense<0.000000e+00> : vector<8x256xf32>
    %4 = tpu.matmul %0, %3, %cst {dimension_numbers = #tpu.dot_dimension_numbers<[1], [0], [0], [1], [0, 0, 1, 1], [], []>} : vector<8x4xf32>, vector<4x256xf32>, vector<8x256xf32> -> vector<8x256xf32>
    %5 = vector.broadcast %1 : vector<8x1xf32> to vector<8x256xf32>
    %6 = arith.addf %4, %5 : vector<8x256xf32>
    %c0_6 = arith.constant 0 : index
    %c0_7 = arith.constant 0 : index
    %c0_8 = arith.constant 0 : index
    %7 = vector.load %arg5[%c0_6, %c0_7, %c0_8] : memref<2x8x256xf32, #tpu.memory_space<vmem>>, vector<1x8x256xf32>
    %8 = vector.shape_cast %7 : vector<1x8x256xf32> to vector<8x256xf32>
    %9 = vector.shape_cast %6 : vector<8x256xf32> to vector<1x8x256xf32>
    tpu.vector_store %arg5[%c0_6, %c0_7, %c0_8], %9 {strides = array<i32>} : memref<2x8x256xf32, #tpu.memory_space<vmem>>, vector<1x8x256xf32>,
    %c1 = arith.constant 1 : index
    %c0_9 = arith.constant 0 : index
    %c0_10 = arith.constant 0 : index
    %10 = vector.load %arg2[%c1, %c0_9, %c0_10] : memref<2x4x256xf32, #tpu.memory_space<vmem>>, vector<1x4x256xf32>
    %11 = vector.shape_cast %10 : vector<1x4x256xf32> to vector<4x256xf32>
    %cst_11 = arith.constant dense<0.000000e+00> : vector<8x256xf32>
    %12 = tpu.matmul %0, %11, %cst_11 {dimension_numbers = #tpu.dot_dimension_numbers<[1], [0], [0], [1], [0, 0, 1, 1], [], []>} : vector<8x4xf32>, vector<4x256xf32>, vector<8x256xf32> -> vector<8x256xf32>
    %13 = vector.broadcast %1 : vector<8x1xf32> to vector<8x256xf32>
    %14 = arith.addf %12, %13 : vector<8x256xf32>
    %c1_12 = arith.constant 1 : index
    %c0_13 = arith.constant 0 : index
    %c0_14 = arith.constant 0 : index
    %15 = vector.load %arg5[%c1_12, %c0_13, %c0_14] : memref<2x8x256xf32, #tpu.memory_space<vmem>>, vector<1x8x256xf32>
    %16 = vector.shape_cast %15 : vector<1x8x256xf32> to vector<8x256xf32>
    %17 = vector.shape_cast %14 : vector<8x256xf32> to vector<1x8x256xf32>
    tpu.vector_store %arg5[%c1_12, %c0_13, %c0_14], %17 {strides = array<i32>} : memref<2x8x256xf32, #tpu.memory_space<vmem>>, vector<1x8x256xf32>,
    return
  }
  func.func @transform_0(%arg0: i32, %arg1: i32) -> (i32, i32, i32) {
    %c0_i32 = arith.constant 0 : i32
    %c0_i32_0 = arith.constant 0 : i32
    return %arg0, %c0_i32, %arg1 : i32, i32, i32
  }
  func.func @transform_1(%arg0: i32, %arg1: i32) -> (i32, i32) {
    %c0_i32 = arith.constant 0 : i32
    %c0_i32_0 = arith.constant 0 : i32
    %c0_i32_1 = arith.constant 0 : i32
    return %c0_i32, %c0_i32_0 : i32, i32
  }
  func.func @transform_2(%arg0: i32, %arg1: i32) -> (i32, i32) {
    %c0_i32 = arith.constant 0 : i32
    %c0_i32_0 = arith.constant 0 : i32
    %c0_i32_1 = arith.constant 0 : i32
    return %c0_i32, %c0_i32_0 : i32, i32
  }
  func.func @transform_3(%arg0: i32, %arg1: i32) -> (i32, i32, i32) {
    %c0_i32 = arith.constant 0 : i32
    %c0_i32_0 = arith.constant 0 : i32
    return %arg0, %c0_i32, %arg1 : i32, i32, i32
  }
}

</mosaic_0001>

<bundles_post_ra>
// kernel: pwise_forward.1
= control target key start
LH: loop header
LB: loop body
LE: loop exit
PB: predicated region body
PF: predicated region fallthrough
CT: control target
= control target key end

     0   :  { %vm28_vm0 = vcmask 1043456   ;;  %v206_v2 = vmov 0.0   ;;  %v207_v5 = vmov 0   ;;  %vm24_vm1 = vcmask 31744   ;;  %s256_s0 = inlined_call_operand.vmem [shape: f32[2,4,256], index: 0, kind: input, shape index: {}]   ;;  %s257_s1 = inlined_call_operand.vmem [shape: f32[8,4], index: 1, kind: input, shape index: {}]   ;;  %s258_s2 = inlined_call_operand.vmem [shape: f32[8,1], index: 2, kind: input, shape index: {}]   ;;  %s259_s3 = inlined_call_operand.vmem [shape: f32[2,8,256], index: 3, kind: output, shape index: {}]  }
   0x1   :  { %v16_v0 = vld [vmem:[%s256_s0] sm:$0xff]  ;;  %v195_v1 = vld [vmem:[%s256_s0 + $0x8] sm:$0xff]  ;;  %97 = vmatprep.mubr.f32.mxu0 %v206_v2  ;;  %178 = vmatprep.mubr.f32.mxu1 %v206_v2 }
   0x2   :  { %v23_v3 = vcombine.high %v16_v0, %v16_v0  ;;  %v109_v4 = vcombine.high %v195_v1, %v195_v1  ;;  %203 = vset.pattern.permute.xlu0 %v207_v5  ;;  %v15_v6 = vld [vmem:[%s258_s2] sm:$0xff] }
   0x3   :  { %v14_v7 = vld [vmem:[%s257_s1] sm:$0xff]  ;;  %19 = vperm.xlu0 %203, %v15_v6  }
   0x4   :  { %192 = vmatprep.subr.msk.mxu0 %vm28_vm0, %v23_v3  ;;  %196 = vmatprep.subr.msk.mxu1 %vm28_vm0, %v109_v4 }
   0x5   :  { %193 = vmatpush1.msk.msra.mxu0 %vm28_vm0, %v16_v0  ;;  %197 = vmatpush1.msk.msra.mxu1 %vm28_vm0, %v195_v1 }
   0x6   :  { %194 = vmatmul.mubr.msk.f32.vlgmr.msra.gmra.mrb[0].mxu0 %vm24_vm1, %v14_v7  ;;  %198 = vmatmul.mubr.msk.f32.vlgmr.msra.gmra.mrb[0].mxu1 %vm24_vm1, %v14_v7 }
  0x82   :  { %v20_v8 = vpop.permute.xlu0 %19 }
  0xd9   :  { %v99_v9 = vpop.f32.mrb[0].mxu0  ;;  %v180_v10 = vpop.f32.mrb[0].mxu1 }
  0xda   :  { %v100_v11 = vadd.f32 %v99_v9, %v20_v8  ;;  %v181_v12 = vadd.f32 %v180_v10, %v20_v8  ;;  %v101_v13 = vpop.f32.mrb[1].mxu0  ;;  %v182_v14 = vpop.f32.mrb[1].mxu1 }
  0xdb   :  { %v102_v15 = vadd.f32 %v101_v13, %v20_v8  ;;  %v183_v16 = vadd.f32 %v182_v14, %v20_v8 }
  0xdc   :  { %104 = vst [vmem:[%s259_s3] sm:$0xff] %v100_v11  ;;  %199 = vst [vmem:[%s259_s3 + $0x10] sm:$0xff] %v181_v12 }
  0xdd   :  { %105 = vst [vmem:[%s259_s3 + $0x8] sm:$0xff] %v102_v15  ;;  %200 = vst [vmem:[%s259_s3 + $0x18] sm:$0xff] %v183_v16 }

</bundles_post_ra>
